<compile_context>
chip_gen: v6e
topology: v6e:2x2x1
jax: 0.10.0
libtpu: 0.0.40
codegen_flags: <defaults>
</compile_context>

<pallas_src>
import jax
import jax.numpy as jnp
from jax.experimental import pallas as pl
from jax.experimental.pallas import tpu as pltpu


def _round_up(x: int, m: int) -> int:
    return ((x + m - 1) // m) * m


def _linear_kernel(x_ref, w_ref, b_ref, o_ref):
    """One (i, j, k) grid step of y = x @ W_T + b.

    x_ref: (tm, tk)  activation tile (bf16 or f32)
    w_ref: (tk, tn)  weight tile, canonical (in, out) layout (bf16 or f32)
    b_ref: (1,  tn)  bias tile (f32, N-tiled)
    o_ref: (tm, tn)  f32 output tile; block index constant along k, so it is
                     VMEM-resident across the reduction and doubles as the
                     accumulator (no scratch needed since out dtype is f32).
    """
    k = pl.program_id(2)

    @pl.when(k == 0)
    def _():
        o_ref[...] = jnp.zeros_like(o_ref)

    o_ref[...] += jnp.dot(
        x_ref[...], w_ref[...], preferred_element_type=jnp.float32
    )

    @pl.when(k == pl.num_programs(2) - 1)
    def _():
        # Bias add in the finalize branch: free VPU filler under an
        # MXU-bound steady state.
        o_ref[...] += b_ref[...]


def linear_regression_forward(
    x, weight, bias, *, tm=512, tn=512, tk=1024, use_bf16_operands=True
):
    """nn.Linear forward: y = x @ weight.T + bias.

    x:      (B, in_features)            float32
    weight: (out_features, in_features) float32 (PyTorch layout)
    bias:   (out_features,)             float32
    returns (B, out_features)           float32
    """
    B, in_features = x.shape
    out_features = weight.shape[0]

    # Clamp tiles to the (aligned) problem size; keep lane/sublane alignment:
    # tm multiple of 8 (sublanes), tn/tk multiples of 128 (lanes).
    tm = min(tm, _round_up(B, 8))
    tn = min(tn, _round_up(out_features, 128))
    tk = min(tk, _round_up(in_features, 128))

    Bp = _round_up(B, tm)
    Np = _round_up(out_features, tn)
    Kp = _round_up(in_features, tk)

    operand_dtype = jnp.bfloat16 if use_bf16_operands else x.dtype
    obytes = jnp.dtype(operand_dtype).itemsize

    # One-time parameter re-layout: (out, in) -> canonical (in, out), cast to
    # the MXU operand dtype, zero-pad to tile multiples.  In a real model this
    # happens once at parameter-load time, not per call.
    w_t = weight.T.astype(operand_dtype)
    if (Kp, Np) != (in_features, out_features):
        w_t = jnp.pad(w_t, ((0, Kp - in_features), (0, Np - out_features)))
    b2 = bias.astype(jnp.float32)
    if Np != out_features:
        b2 = jnp.pad(b2, (0, Np - out_features))
    b2 = b2.reshape(1, Np)

    # Activation: K zero-padding is required for reduction correctness; M
    # padding only happens if B isn't a multiple of the (clamped) tm.
    xo = x.astype(operand_dtype)
    if (Bp, Kp) != (B, in_features):
        xo = jnp.pad(xo, ((0, Bp - B), (0, Kp - in_features)))

    grid = (Bp // tm, Np // tn, Kp // tk)

    # Advisory cost: include the tiling re-read factors for x and W.
    cost = pl.CostEstimate(
        flops=2 * Bp * Kp * Np,
        bytes_accessed=(
            obytes * Bp * Kp * (Np // tn)     # x re-read once per N tile
            + obytes * Kp * Np * (Bp // tm)   # W re-read once per M tile
            + 4 * Bp * Np                     # output write
            + 4 * Np                          # bias
        ),
        transcendentals=0,
    )

    # Explicit scoped-VMEM limit sized from the double-buffered working set,
    # capped safely below v7x's 64 MiB physical VMEM.
    est_vmem = 2 * (tm * tk * obytes + tk * tn * obytes + tn * 4) + 2 * tm * tn * 4
    vmem_limit = int(min(max(2 * est_vmem, 32 * 1024 * 1024), 56 * 1024 * 1024))

    y = pl.pallas_call(
        _linear_kernel,
        out_shape=jax.ShapeDtypeStruct((Bp, Np), jnp.float32),
        grid_spec=pltpu.PrefetchScalarGridSpec(
            num_scalar_prefetch=0,
            grid=grid,
            in_specs=[
                pl.BlockSpec((tm, tk), lambda i, j, k: (i, k)),  # x
                pl.BlockSpec((tk, tn), lambda i, j, k: (k, j)),  # W.T (in, out)
                pl.BlockSpec((1, tn), lambda i, j, k: (0, j)),   # bias
            ],
            out_specs=pl.BlockSpec((tm, tn), lambda i, j, k: (i, j)),
        ),
        compiler_params=pltpu.CompilerParams(
            dimension_semantics=("parallel", "parallel", "arbitrary"),
            vmem_limit_bytes=vmem_limit,
        ),
        cost_estimate=cost,
    )(xo, w_t, b2)

    return y[:B, :out_features]


if __name__ == "__main__":
    # Small shapes consistent with LinearRegression(input_dim, output_dim).
    # NOTE: at these demo sizes the call is launch-overhead bound and the
    # (i, j) grid collapses to one block (so one v7x TC idles); the tiling
    # pays off once B / in / out reach the hundreds-to-thousands.
    batch, input_dim, output_dim = 8, 32, 16

    key = jax.random.PRNGKey(0)
    kx, kw, kb = jax.random.split(key, 3)

    x = jax.random.normal(kx, (batch, input_dim), dtype=jnp.float32)
    # Deterministic parameter init (PyTorch Linear-style uniform bound).
    bound = 1.0 / (input_dim ** 0.5)
    weight = jax.random.uniform(kw, (output_dim, input_dim),
                                minval=-bound, maxval=bound, dtype=jnp.float32)
    bias = jax.random.uniform(kb, (output_dim,),
                              minval=-bound, maxval=bound, dtype=jnp.float32)

    y = linear_regression_forward(x, weight, bias)
    jax.block_until_ready(y)
    assert y.shape == (batch, output_dim)

    # Reference check: exact-ish against a bf16-rounded-operand f32 matmul
    # (matches the kernel's bf16-in / f32-accumulate numerics), and loose
    # against the pure f32 reference.
    x_q = x.astype(jnp.bfloat16).astype(jnp.float32)
    w_q = weight.astype(jnp.bfloat16).astype(jnp.float32)
    y_ref_q = x_q @ w_q.T + bias
    y_ref_f32 = x @ weight.T + bias
    assert jnp.allclose(y, y_ref_q, atol=1e-4, rtol=1e-4)
    assert jnp.allclose(y, y_ref_f32, atol=5e-2, rtol=5e-2)

    print("KERNEL_OK")
</pallas_src>

<mosaic_0001>
module attributes {stable_mosaic.version = 11 : i64} {
  func.func @_linear_kernel(%arg0: i32, %arg1: i32, %arg2: i32, %arg3: memref<8x128xbf16, #tpu.memory_space<vmem>>, %arg4: memref<128x128xbf16, #tpu.memory_space<vmem>>, %arg5: memref<1x128xf32, #tpu.memory_space<vmem>>, %arg6: memref<8x128xf32, #tpu.memory_space<vmem>>) attributes {dimension_semantics = [#tpu.dimension_semantics<parallel>, #tpu.dimension_semantics<parallel>, #tpu.dimension_semantics<arbitrary>], iteration_bounds = array<i64: 1, 1, 1>, scalar_prefetch = 0 : i64, scratch_operands = 0 : i64, tpu.core_type = #tpu.core_type<tc>, window_params = [{transform_indices = @transform_0, window_bounds = array<i64: 8, 128>}, {transform_indices = @transform_1, window_bounds = array<i64: 128, 128>}, {transform_indices = @transform_2, window_bounds = array<i64: 1, 128>}, {transform_indices = @transform_3, window_bounds = array<i64: 8, 128>}]} {
    %c0_i32 = arith.constant 0 : i32
    %0 = arith.cmpi eq, %arg2, %c0_i32 : i32
    %1 = arith.extui %0 : i1 to i32
    %c0_i32_0 = arith.constant 0 : i32
    %2 = arith.cmpi ne, %1, %c0_i32_0 : i32
    scf.if %2 {
      %cst_10 = arith.constant 0.000000e+00 : f32
      %12 = vector.broadcast %cst_10 : f32 to vector<8x128xf32>
      %c0_11 = arith.constant 0 : index
      %c0_12 = arith.constant 0 : index
      %13 = vector.load %arg6[%c0_11, %c0_12] : memref<8x128xf32, #tpu.memory_space<vmem>>, vector<8x128xf32>
      tpu.vector_store %arg6[%c0_11, %c0_12], %12 {strides = array<i32>} : memref<8x128xf32, #tpu.memory_space<vmem>>, vector<8x128xf32>,
    } else {
    }
    %c0 = arith.constant 0 : index
    %c0_1 = arith.constant 0 : index
    %3 = vector.load %arg6[%c0, %c0_1] : memref<8x128xf32, #tpu.memory_space<vmem>>, vector<8x128xf32>
    %c0_2 = arith.constant 0 : index
    %c0_3 = arith.constant 0 : index
    %4 = vector.load %arg3[%c0_2, %c0_3] : memref<8x128xbf16, #tpu.memory_space<vmem>>, vector<8x128xbf16>
    %c0_4 = arith.constant 0 : index
    %c0_5 = arith.constant 0 : index
    %5 = vector.load %arg4[%c0_4, %c0_5] : memref<128x128xbf16, #tpu.memory_space<vmem>>, vector<128x128xbf16>
    %cst = arith.constant dense<0.000000e+00> : vector<8x128xf32>
    %6 = tpu.matmul %4, %5, %cst {dimension_numbers = #tpu.dot_dimension_numbers<[1], [0], [0], [1], [0, 0, 1, 1], [], []>} : vector<8x128xbf16>, vector<128x128xbf16>, vector<8x128xf32> -> vector<8x128xf32>
    %7 = arith.addf %3, %6 : vector<8x128xf32>
    %c0_6 = arith.constant 0 : index
    %c0_7 = arith.constant 0 : index
    %8 = vector.load %arg6[%c0_6, %c0_7] : memref<8x128xf32, #tpu.memory_space<vmem>>, vector<8x128xf32>
    tpu.vector_store %arg6[%c0_6, %c0_7], %7 {strides = array<i32>} : memref<8x128xf32, #tpu.memory_space<vmem>>, vector<8x128xf32>,
    %c0_i32_8 = arith.constant 0 : i32
    %9 = arith.cmpi eq, %arg2, %c0_i32_8 : i32
    %10 = arith.extui %9 : i1 to i32
    %c0_i32_9 = arith.constant 0 : i32
    %11 = arith.cmpi ne, %10, %c0_i32_9 : i32
    scf.if %11 {
      %c0_10 = arith.constant 0 : index
      %c0_11 = arith.constant 0 : index
      %12 = vector.load %arg6[%c0_10, %c0_11] : memref<8x128xf32, #tpu.memory_space<vmem>>, vector<8x128xf32>
      %c0_12 = arith.constant 0 : index
      %c0_13 = arith.constant 0 : index
      %13 = vector.load %arg5[%c0_12, %c0_13] : memref<1x128xf32, #tpu.memory_space<vmem>>, vector<1x128xf32>
      %14 = vector.broadcast %13 : vector<1x128xf32> to vector<8x128xf32>
      %15 = arith.addf %12, %14 : vector<8x128xf32>
      %c0_14 = arith.constant 0 : index
      %c0_15 = arith.constant 0 : index
      %16 = vector.load %arg6[%c0_14, %c0_15] : memref<8x128xf32, #tpu.memory_space<vmem>>, vector<8x128xf32>
      tpu.vector_store %arg6[%c0_14, %c0_15], %15 {strides = array<i32>} : memref<8x128xf32, #tpu.memory_space<vmem>>, vector<8x128xf32>,
    } else {
    }
    return
  }
  func.func @transform_0(%arg0: i32, %arg1: i32, %arg2: i32) -> (i32, i32) {
    %c0_i32 = arith.constant 0 : i32
    return %arg0, %arg2 : i32, i32
  }
  func.func @transform_1(%arg0: i32, %arg1: i32, %arg2: i32) -> (i32, i32) {
    %c0_i32 = arith.constant 0 : i32
    return %arg2, %arg1 : i32, i32
  }
  func.func @transform_2(%arg0: i32, %arg1: i32, %arg2: i32) -> (i32, i32) {
    %c0_i32 = arith.constant 0 : i32
    %c0_i32_0 = arith.constant 0 : i32
    return %c0_i32, %arg1 : i32, i32
  }
  func.func @transform_3(%arg0: i32, %arg1: i32, %arg2: i32) -> (i32, i32) {
    %c0_i32 = arith.constant 0 : i32
    return %arg0, %arg1 : i32, i32
  }
}

</mosaic_0001>

<bundles_post_ra>
// kernel: tpu_custom_call.1
= control target key start
LH: loop header
LB: loop body
LE: loop exit
PB: predicated region body
PF: predicated region fallthrough
CT: control target
= control target key end

     0   :  { %8 = vsyncpa [#allocation3], 0  ;;  %s342_s0 = inlined_call_operand.hbm [shape: bf16[8,128], index: 0, kind: input, shape index: {}]   ;;  %s343_s1 = inlined_call_operand.hbm [shape: bf16[128,128], index: 1, kind: input, shape index: {}]   ;;  %s344_s2 = inlined_call_operand.vmem [shape: f32[1,128], index: 2, kind: input, shape index: {}]   ;;  %s345_s3 = inlined_call_operand.hbm [shape: f32[8,128], index: 3, kind: output, shape index: {}]  }
   0x1   :  { %9 = vsyncpa [#allocation6], 0 }
   0x2   :  { %10 = vsyncpa [#allocation4], 0  ;;  %s303_s12 = smov [#allocation2]   ;;  %s304_s14 = smov [#allocation5]  }
   0x3   :  { %s17_s13 = sshll.u32 %s303_s12, 4  ;;  %s26_s15 = sshll.u32 %s304_s14, 4  ;;  %s18_s13 = int_to_ptr.vmem [resolvable:$true] %s17_s13  ;;  %s27_s15 = int_to_ptr.vmem [resolvable:$true] %s26_s15 }
   0x4   :  { %s245_s16 = scalar_lea.vmem %s18_s13, 64  ;;  %p250_p1 = scmp.lt.s32.totalorder %s18_s13, %s18_s13 }
   0x5   :  { %p246_p0 = scmp.ne.s32.totalorder %s18_s13, %s245_s16  ;;  %p251_p2 = scmp.lt.s32.totalorder %s245_s16, %s245_s16 }
   0x7   :  { %p252_p3 = por %p251_p2, %p250_p1 }
   0x9   :  { %p253_p4 = pnand %p252_p3, %p246_p0 }
   0xb   :  { %256 = shalt.err (!%p253_p4)
}
   0xc   :  { %20 = dma.hbm_to_vmem [thread:$0]  %s342_s0, 64, %s18_s13, [#allocation3]  }
   0xd   :  { %s265_s19 = scalar_lea.vmem %s27_s15, 1024  ;;  %p270_p6 = scmp.lt.s32.totalorder %s27_s15, %s27_s15 }
   0xe   :  { %p266_p5 = scmp.ne.s32.totalorder %s27_s15, %s265_s19  ;;  %p271_p7 = scmp.lt.s32.totalorder %s265_s19, %s265_s19 }
  0x10   :  { %p272_p8 = por %p271_p7, %p270_p6 }
  0x12   :  { %p273_p9 = pnand %p272_p8, %p266_p5 }
  0x14   :  { %276 = shalt.err (!%p273_p9)
}
  0x15   :  { %s305_s20 = smov 64   ;;  %s306_s21 = smov 4  }
  0x16   :  { %32 = dma.hbm_to_vmem [thread:$0]  %s343_s1, 1024, %s27_s15, [#allocation6], %s305_s20, %s305_s20, %s306_s21  }
  0x17   :  { %297 = dma.done.wait [#allocation3], 64  }
  0x18   :  { %298 = vsyncadd [#allocation3], 4294967232 }
  0x19   :  { %299 = dma.done.wait [#allocation6], 1024  }
  0x1a   :  { %300 = vsyncadd [#allocation6], 4294966272  ;;  %v307_v0 = vmov 0.0   ;;  %vm308_vm0 = vmmov 0   ;;  %v229_v1 = vld [vmem:[#allocation5 + $0x38] sm:$0xff]   ;;  %v230_v2 = vld [vmem:[#allocation5 + $0x30] sm:$0xff]  }
  0x1b   :  { %202 = vmatprep.subr.bf16.mxu0 %v307_v0  ;;  %218 = vmatprep.mubr.msk.bf16.mxu0 %vm308_vm0, %v307_v0  ;;  %v231_v3 = vld [vmem:[#allocation5 + $0x28] sm:$0xff]   ;;  %v232_v4 = vld [vmem:[#allocation5 + $0x20] sm:$0xff]   ;;  %v233_v5 = vld [vmem:[#allocation5 + $0x18] sm:$0xff]   ;;  %s309_s24 = smov [#allocation7]  }
  0x1c   :  { %203 = vmatpush3.bf16.msra.mxu0 %v229_v1  ;;  %v234_v6 = vld [vmem:[#allocation5 + $0x10] sm:$0xff]   ;;  %v235_v7 = vld [vmem:[#allocation5 + $0x8] sm:$0xff]   ;;  %v236_v8 = vld [vmem:[#allocation5] sm:$0xff]   ;;  %s174_s25 = sshll.u32 %s309_s24, 4  ;;  %s175_s25 = int_to_ptr.vmem [resolvable:$true] %s174_s25 }
  0x1d   :  { %204 = vmatprep.subr.bf16.mxu0 %v307_v0  ;;  %v48_v9 = vld [vmem:[#allocation2] sm:$0xf]  ;;  %s277_s26 = scalar_lea.vmem %s175_s25, 128  ;;  %p282_p11 = scmp.lt.s32.totalorder %s175_s25, %s175_s25 }
  0x1e   :  { %v192_v11 = vld [vmem:[%s344_s2] ss:$0 sm:$0xff]  ;;  %p278_p10 = scmp.ne.s32.totalorder %s175_s25, %s277_s26  ;;  %p283_p12 = scmp.lt.s32.totalorder %s277_s26, %s277_s26 }
  0x20   :  { %205 = vmatpush3.bf16.msra.mxu0 %v230_v2  ;;  %p284_p13 = por %p283_p12, %p282_p11 }
  0x21   :  { %206 = vmatprep.subr.bf16.mxu0 %v307_v0 }
  0x22   :  { %p285_p0 = pnand %p284_p13, %p278_p10 }
  0x24   :  { %207 = vmatpush3.bf16.msra.mxu0 %v231_v3 }
  0x25   :  { %208 = vmatprep.subr.bf16.mxu0 %v307_v0 }
  0x28   :  { %209 = vmatpush3.bf16.msra.mxu0 %v232_v4 }
  0x29   :  { %210 = vmatprep.subr.bf16.mxu0 %v307_v0 }
  0x2c   :  { %211 = vmatpush3.bf16.msra.mxu0 %v233_v5 }
  0x2d   :  { %212 = vmatprep.subr.bf16.mxu0 %v307_v0 }
  0x30   :  { %213 = vmatpush3.bf16.msra.mxu0 %v234_v6 }
  0x31   :  { %214 = vmatprep.subr.bf16.mxu0 %v307_v0 }
  0x34   :  { %215 = vmatpush3.bf16.msra.mxu0 %v235_v7 }
  0x35   :  { %216 = vmatprep.subr.bf16.mxu0 %v307_v0 }
  0x38   :  { %217 = vmatpush3.bf16.msra.mxu0 %v236_v8 }
  0x3b   :  { %219 = vmatmul.mubr.bf16.vlgmr.msra.gmra.mxu0 %v48_v9 }
  0xfb   :  { %v147_v10 = vpop.f32.mrf.mxu0 }
  0xfc   :  { %v166_v13 = vadd.f32 %v192_v11, %v147_v10 }
  0xfd   :  { %v220_v12 = vpop.f32.mrf.mxu0 }
  0xfe   :  { %167 = vst [vmem:[#allocation7] sm:$0xff] %v166_v13 }
  0xff   :  { %v150_v14 = vpop.f32.mrf.mxu0 }
 0x101   :  { %v221_v15 = vpop.f32.mrf.mxu0 }
 0x102   :  { %288 = shalt.err (!%p285_p0)
}
 0x103   :  { %177 = dma.vmem_to_hbm [thread:$0]  %s175_s25, 128, %s345_s3, [#allocation4]  }
 0x104   :  { %301 = dma.done.wait [#allocation4], 128  }
 0x105   :  { %302 = vsyncadd [#allocation4], 4294967168 }
 0x106   :  { %181 = vsyncpa [#allocation3], 1 }
 0x107   :  { %182 = vsyncpa [#allocation6], 1 }
 0x108   :  { %183 = vsyncpa [#allocation4], 1 }

</bundles_post_ra>
